<compile_context>
chip_gen: v5e
topology: v5e:2x2
jax: 0.10.0
libtpu: 0.0.40
codegen_flags: <defaults>
</compile_context>

<pallas_src>
import functools

import jax
import jax.numpy as jnp
from jax.experimental import pallas as pl
from jax.experimental.pallas import tpu as pltpu


def _chamfer_tile_kernel(x_ref, y_ref, d1_ref, d2_ref):
    """One (tn x tm) tile of the pairwise squared-distance matrix.

    x_ref : (1, tn, 8)       augmented lhs rows    [ p, |p|^2, 1, 0... ]
    y_ref : (1, 8, tm)       augmented rhs columns [ -2q, 1, |q|^2, 0... ]
    d1_ref: (1, tn, 1)       running min over M (resident across the mj axis)
    d2_ref: (1, Mtiles, tm)  running min over N (resident per batch)
    """
    ni = pl.program_id(1)
    mj = pl.program_id(2)

    x = x_ref[0]                                              # (tn, 8)
    yt = y_ref[0]                                             # (8, tm)

    # MXU produces the squared distances directly:
    #   d[i, j] = |p_i|^2 + |q_j|^2 - 2 p_i . q_j
    d = jnp.dot(x, yt, preferred_element_type=jnp.float32)    # (tn, tm)

    row_min = jnp.min(d, axis=1, keepdims=True)               # (tn, 1)
    col_min = jnp.min(d, axis=0, keepdims=True)               # (1, tm)

    # dist1: per-N-tile accumulator, re-initialised on the first M tile.
    @pl.when(mj == 0)
    def _():
        d1_ref[0] = row_min

    @pl.when(mj != 0)
    def _():
        d1_ref[0] = jnp.minimum(d1_ref[0], row_min)

    # dist2: full per-batch accumulator, re-initialised on the first N tile;
    # a dynamic sublane index selects the current M tile.
    @pl.when(ni == 0)
    def _():
        d2_ref[0, pl.ds(mj, 1), :] = col_min

    @pl.when(ni != 0)
    def _():
        cur = d2_ref[0, pl.ds(mj, 1), :]
        d2_ref[0, pl.ds(mj, 1), :] = jnp.minimum(cur, col_min)


def _round_up(v, m):
    return ((v + m - 1) // m) * m


@functools.partial(jax.jit, static_argnames=("tile_n", "tile_m"))
def l2_chamfer_loss(array1, array2, *, tile_n=512, tile_m=512):
    """array1: (B, N, D), array2: (B, M, D) -> scalar (mean(dist1)+mean(dist2))."""
    array1 = array1.astype(jnp.float32)
    array2 = array2.astype(jnp.float32)
    B, N, D = array1.shape
    B2, M, D2 = array2.shape
    assert B == B2 and D == D2 and D + 2 <= 8

    BIG = 1e18  # sentinel "squared norm" for padded points (never wins a min)

    # Tile sizes (multiples of 128); pad N, M up to whole tiles.
    tn = min(tile_n, _round_up(N, 128))
    tm = min(tile_m, _round_up(M, 128))
    Npad = _round_up(N, tn)
    Mpad = _round_up(M, tm)
    n_tiles = Npad // tn
    m_tiles = Mpad // tm

    # ---- augmented operands (cheap O(B*(N+M)*8) work, built once in XLA) ----
    x_sq = jnp.sum(array1 * array1, axis=-1, keepdims=True)           # (B, N, 1)
    ones_x = jnp.ones_like(x_sq)
    zpad_x = jnp.zeros((B, N, 8 - (D + 2)), jnp.float32)
    x_aug = jnp.concatenate([array1, x_sq, ones_x, zpad_x], axis=-1)  # (B, N, 8)
    if Npad > N:
        pad_row = jnp.zeros((8,), jnp.float32).at[D].set(BIG)         # |p|^2 slot
        x_aug = jnp.concatenate(
            [x_aug, jnp.broadcast_to(pad_row, (B, Npad - N, 8))], axis=1)

    y_sq = jnp.sum(array2 * array2, axis=-1, keepdims=True)           # (B, M, 1)
    ones_y = jnp.ones_like(y_sq)
    zpad_y = jnp.zeros((B, M, 8 - (D + 2)), jnp.float32)
    y_aug = jnp.concatenate([-2.0 * array2, ones_y, y_sq, zpad_y], axis=-1)
    if Mpad > M:
        pad_col = jnp.zeros((8,), jnp.float32).at[D + 1].set(BIG)     # |q|^2 slot
        y_aug = jnp.concatenate(
            [y_aug, jnp.broadcast_to(pad_col, (B, Mpad - M, 8))], axis=1)
    y_aug_t = jnp.transpose(y_aug, (0, 2, 1))                         # (B, 8, Mpad)

    dist1_col, dist2_tiles = pl.pallas_call(
        _chamfer_tile_kernel,
        out_shape=(
            jax.ShapeDtypeStruct((B, Npad, 1), jnp.float32),
            jax.ShapeDtypeStruct((B, m_tiles, tm), jnp.float32),
        ),
        grid_spec=pltpu.PrefetchScalarGridSpec(
            num_scalar_prefetch=0,
            grid=(B, n_tiles, m_tiles),
            in_specs=[
                pl.BlockSpec((1, tn, 8), lambda b, ni, mj: (b, ni, 0)),
                pl.BlockSpec((1, 8, tm), lambda b, ni, mj: (b, 0, mj)),
            ],
            out_specs=[
                pl.BlockSpec((1, tn, 1), lambda b, ni, mj: (b, ni, 0)),
                pl.BlockSpec((1, m_tiles, tm), lambda b, ni, mj: (b, 0, 0)),
            ],
        ),
        compiler_params=pltpu.CompilerParams(
            dimension_semantics=("parallel", "arbitrary", "arbitrary"),
            vmem_limit_bytes=32 * 1024 * 1024,
        ),
    )(x_aug, y_aug_t)

    # Glue: drop padded entries, clamp the tiny residual negatives, take means.
    dist1 = jnp.maximum(dist1_col[:, :N, 0], 0.0)                     # (B, N)
    dist2 = jnp.maximum(dist2_tiles.reshape(B, Mpad)[:, :M], 0.0)     # (B, M)
    return jnp.mean(dist1) + jnp.mean(dist2)


def _reference(array1, array2):
    """Pure-JAX reference (direct differences)."""
    diff = array1[:, :, None, :] - array2[:, None, :, :]              # (B, N, M, D)
    d = jnp.sum(diff * diff, axis=-1)                                 # (B, N, M)
    dist1 = jnp.min(d, axis=2)                                        # (B, N)
    dist2 = jnp.min(d, axis=1)                                        # (B, M)
    return jnp.mean(dist1) + jnp.mean(dist2)


if __name__ == "__main__":
    key = jax.random.PRNGKey(0)
    k1, k2 = jax.random.split(key)
    B, N, M, D = 2, 128, 96, 3
    array1 = jax.random.uniform(k1, (B, N, D), dtype=jnp.float32)
    array2 = jax.random.uniform(k2, (B, M, D), dtype=jnp.float32)

    out = l2_chamfer_loss(array1, array2)
    out = jax.block_until_ready(out)

    ref = _reference(array1, array2)
    assert jnp.allclose(out, ref, rtol=1e-3, atol=1e-4), (out, ref)

    print("KERNEL_OK")
</pallas_src>

<mosaic_0001>
module attributes {stable_mosaic.version = 11 : i64} {
  func.func @_chamfer_tile_kernel(%arg0: i32, %arg1: i32, %arg2: i32, %arg3: memref<1x128x8xf32, #tpu.memory_space<vmem>>, %arg4: memref<1x8x128xf32, #tpu.memory_space<vmem>>, %arg5: memref<1x128x1xf32, #tpu.memory_space<vmem>>, %arg6: memref<1x1x128xf32, #tpu.memory_space<vmem>>) attributes {dimension_semantics = [#tpu.dimension_semantics<parallel>, #tpu.dimension_semantics<arbitrary>, #tpu.dimension_semantics<arbitrary>], iteration_bounds = array<i64: 2, 1, 1>, scalar_prefetch = 0 : i64, scratch_operands = 0 : i64, tpu.core_type = #tpu.core_type<tc>, window_params = [{transform_indices = @transform_0, window_bounds = array<i64: 1, 128, 8>}, {transform_indices = @transform_1, window_bounds = array<i64: 1, 8, 128>}, {transform_indices = @transform_2, window_bounds = array<i64: 1, 128, 1>}, {transform_indices = @transform_3, window_bounds = array<i64: 1, 1, 128>}]} {
    %c0 = arith.constant 0 : index
    %c0_0 = arith.constant 0 : index
    %c0_1 = arith.constant 0 : index
    %0 = vector.load %arg3[%c0, %c0_0, %c0_1] : memref<1x128x8xf32, #tpu.memory_space<vmem>>, vector<1x128x8xf32>
    %1 = vector.shape_cast %0 : vector<1x128x8xf32> to vector<128x8xf32>
    %c0_2 = arith.constant 0 : index
    %c0_3 = arith.constant 0 : index
    %c0_4 = arith.constant 0 : index
    %2 = vector.load %arg4[%c0_2, %c0_3, %c0_4] : memref<1x8x128xf32, #tpu.memory_space<vmem>>, vector<1x8x128xf32>
    %3 = vector.shape_cast %2 : vector<1x8x128xf32> to vector<8x128xf32>
    %cst = arith.constant dense<0.000000e+00> : vector<128x128xf32>
    %4 = tpu.matmul %1, %3, %cst {dimension_numbers = #tpu.dot_dimension_numbers<[1], [0], [0], [1], [0, 0, 1, 1], [], []>} : vector<128x8xf32>, vector<8x128xf32>, vector<128x128xf32> -> vector<128x128xf32>
    %cst_5 = arith.constant dense<0x7F800000> : vector<128xf32>
    %5 = vector.multi_reduction <minimumf>, %4, %cst_5 [1] : vector<128x128xf32> to vector<128xf32>
    %6 = vector.shape_cast %5 : vector<128xf32> to vector<128x1xf32>
    %cst_6 = arith.constant dense<0x7F800000> : vector<128xf32>
    %7 = vector.multi_reduction <minimumf>, %4, %cst_6 [0] : vector<128x128xf32> to vector<128xf32>
    %8 = vector.shape_cast %7 : vector<128xf32> to vector<1x128xf32>
    %c0_i32 = arith.constant 0 : i32
    %9 = arith.cmpi eq, %arg2, %c0_i32 : i32
    %10 = arith.extui %9 : i1 to i32
    %c0_i32_7 = arith.constant 0 : i32
    %11 = arith.cmpi ne, %10, %c0_i32_7 : i32
    scf.if %11 {
      %c0_14 = arith.constant 0 : index
      %c0_15 = arith.constant 0 : index
      %c0_16 = arith.constant 0 : index
      %21 = vector.load %arg5[%c0_14, %c0_15, %c0_16] : memref<1x128x1xf32, #tpu.memory_space<vmem>>, vector<1x128x1xf32>
      %22 = vector.shape_cast %21 : vector<1x128x1xf32> to vector<128x1xf32>
      %23 = vector.shape_cast %6 : vector<128x1xf32> to vector<1x128x1xf32>
      tpu.vector_store %arg5[%c0_14, %c0_15, %c0_16], %23 {strides = array<i32>} : memref<1x128x1xf32, #tpu.memory_space<vmem>>, vector<1x128x1xf32>,
    } else {
    }
    %c0_i32_8 = arith.constant 0 : i32
    %12 = arith.cmpi ne, %arg2, %c0_i32_8 : i32
    %13 = arith.extui %12 : i1 to i32
    %c0_i32_9 = arith.constant 0 : i32
    %14 = arith.cmpi ne, %13, %c0_i32_9 : i32
    scf.if %14 {
      %c0_14 = arith.constant 0 : index
      %c0_15 = arith.constant 0 : index
      %c0_16 = arith.constant 0 : index
      %21 = vector.load %arg5[%c0_14, %c0_15, %c0_16] : memref<1x128x1xf32, #tpu.memory_space<vmem>>, vector<1x128x1xf32>
      %22 = vector.shape_cast %21 : vector<1x128x1xf32> to vector<128x1xf32>
      %23 = arith.minimumf %22, %6 : vector<128x1xf32>
      %c0_17 = arith.constant 0 : index
      %c0_18 = arith.constant 0 : index
      %c0_19 = arith.constant 0 : index
      %24 = vector.load %arg5[%c0_17, %c0_18, %c0_19] : memref<1x128x1xf32, #tpu.memory_space<vmem>>, vector<1x128x1xf32>
      %25 = vector.shape_cast %24 : vector<1x128x1xf32> to vector<128x1xf32>
      %26 = vector.shape_cast %23 : vector<128x1xf32> to vector<1x128x1xf32>
      tpu.vector_store %arg5[%c0_17, %c0_18, %c0_19], %26 {strides = array<i32>} : memref<1x128x1xf32, #tpu.memory_space<vmem>>, vector<1x128x1xf32>,
    } else {
    }
    %c0_i32_10 = arith.constant 0 : i32
    %15 = arith.cmpi eq, %arg1, %c0_i32_10 : i32
    %16 = arith.extui %15 : i1 to i32
    %c0_i32_11 = arith.constant 0 : i32
    %17 = arith.cmpi ne, %16, %c0_i32_11 : i32
    scf.if %17 {
      %c0_14 = arith.constant 0 : index
      %21 = arith.index_cast %arg2 : i32 to index
      %c0_15 = arith.constant 0 : index
      %22 = vector.load %arg6[%c0_14, %21, %c0_15] : memref<1x1x128xf32, #tpu.memory_space<vmem>>, vector<1x1x128xf32>
      %23 = vector.shape_cast %22 : vector<1x1x128xf32> to vector<1x128xf32>
      %24 = vector.shape_cast %8 : vector<1x128xf32> to vector<1x1x128xf32>
      tpu.vector_store %arg6[%c0_14, %21, %c0_15], %24 {strides = array<i32>} : memref<1x1x128xf32, #tpu.memory_space<vmem>>, vector<1x1x128xf32>,
    } else {
    }
    %c0_i32_12 = arith.constant 0 : i32
    %18 = arith.cmpi ne, %arg1, %c0_i32_12 : i32
    %19 = arith.extui %18 : i1 to i32
    %c0_i32_13 = arith.constant 0 : i32
    %20 = arith.cmpi ne, %19, %c0_i32_13 : i32
    scf.if %20 {
      %c0_14 = arith.constant 0 : index
      %21 = arith.index_cast %arg2 : i32 to index
      %c0_15 = arith.constant 0 : index
      %22 = vector.load %arg6[%c0_14, %21, %c0_15] : memref<1x1x128xf32, #tpu.memory_space<vmem>>, vector<1x1x128xf32>
      %23 = vector.shape_cast %22 : vector<1x1x128xf32> to vector<1x128xf32>
      %24 = arith.minimumf %23, %8 : vector<1x128xf32>
      %c0_16 = arith.constant 0 : index
      %25 = arith.index_cast %arg2 : i32 to index
      %c0_17 = arith.constant 0 : index
      %26 = vector.load %arg6[%c0_16, %25, %c0_17] : memref<1x1x128xf32, #tpu.memory_space<vmem>>, vector<1x1x128xf32>
      %27 = vector.shape_cast %26 : vector<1x1x128xf32> to vector<1x128xf32>
      %28 = vector.shape_cast %24 : vector<1x128xf32> to vector<1x1x128xf32>
      tpu.vector_store %arg6[%c0_16, %25, %c0_17], %28 {strides = array<i32>} : memref<1x1x128xf32, #tpu.memory_space<vmem>>, vector<1x1x128xf32>,
    } else {
    }
    return
  }
  func.func @transform_0(%arg0: i32, %arg1: i32, %arg2: i32) -> (i32, i32, i32) {
    %c0_i32 = arith.constant 0 : i32
    %c0_i32_0 = arith.constant 0 : i32
    return %arg0, %arg1, %c0_i32 : i32, i32, i32
  }
  func.func @transform_1(%arg0: i32, %arg1: i32, %arg2: i32) -> (i32, i32, i32) {
    %c0_i32 = arith.constant 0 : i32
    %c0_i32_0 = arith.constant 0 : i32
    return %arg0, %c0_i32, %arg2 : i32, i32, i32
  }
  func.func @transform_2(%arg0: i32, %arg1: i32, %arg2: i32) -> (i32, i32, i32) {
    %c0_i32 = arith.constant 0 : i32
    %c0_i32_0 = arith.constant 0 : i32
    return %arg0, %arg1, %c0_i32 : i32, i32, i32
  }
  func.func @transform_3(%arg0: i32, %arg1: i32, %arg2: i32) -> (i32, i32, i32) {
    %c0_i32 = arith.constant 0 : i32
    %c0_i32_0 = arith.constant 0 : i32
    %c0_i32_1 = arith.constant 0 : i32
    return %arg0, %c0_i32, %c0_i32_0 : i32, i32, i32
  }
}

</mosaic_0001>

<bundles_post_ra>
// kernel: l2_chamfer_loss.1
= control target key start
LH: loop header
LB: loop body
LE: loop exit
PB: predicated region body
PF: predicated region fallthrough
CT: control target
= control target key end

     0   :  { %s759_s12 = smov 0   ;;  %s761_s13 = smov 0   ;;  %s875_s0 = inlined_call_operand.vmem [shape: f32[2,128,8], index: 0, kind: input, shape index: {}]   ;;  %s876_s1 = inlined_call_operand.vmem [shape: f32[2,8,128], index: 1, kind: input, shape index: {}]   ;;  %s877_s2 = inlined_call_operand.vmem [shape: f32[2,128,1], index: 2, kind: output, shape index: {0}]   ;;  %s878_s3 = inlined_call_operand.vmem [shape: f32[2,1,128], index: 3, kind: output, shape index: {1}]  }
   0x1   :  { %s763_s14 = smov 0  }
   0x2 LB: > { %s33_s15 = sadd.s32 1, %s733_s13  ;;  %p662_p0 = scmp.ge.s32.totalorder %s737_s14, 1  ;;  %s737_s14 = sphi %s763_s14, %s14_s14   ;;  %s733_s13 = sphi %s761_s13, %s880_s13   ;;  %s729_s12 = sphi %s759_s12, %s879_s12  }
   0x3   : > { %p35_p1 = scmp.ge.s32.totalorder %s33_s15, 2  ;;  %p182_p2 = scmp.lt.s32.totalorder %s737_s14, 3 }
   0x5   : > { %s882_s15 = smov (%p35_p1, %s33_s15), 0  ;;  %p183_p3 = pnand %p662_p0, %p182_p2 }
   0x6   : > { %p225_p4 = scmp.lt.s32.totalorder (!%p183_p3), %s729_s12, 1 }
   0x7   : > { %186 = sbr.rel (%p183_p3) target bundleno = 308 (0x134), region = 28 }
   0xc   : > { %s884_s12 = smov (!%p225_p4, %s729_s12), 1  ;;  %vm271_vm0 = vcmask 64512   ;;  %vm442_vm1 = vcmask 7168  }
   0xd   : > { %s686_s16 = sshll.u32 %s884_s12, 7  ;;  %s665_s17 = sshll.u32 %s884_s12, 3 }
   0xe   : > { %s786_s20 = scalar_lea.vmem %s875_s0, %s686_s16  ;;  %s240_s23 = scalar_lea.vmem %s876_s1, %s665_s17 }
   0xf   : > { %v270_v0 = vld [vmem:[%s240_s23] sm:$0xff]  ;;  %v255_v5 = vld [vmem:[%s786_s20 + $0x8] sm:$0xff]  ;;  %v256_v9 = vld [vmem:[%s786_s20 + $0x10] sm:$0xff]  ;;  %s253_s26 = scalar_lea.vmem %s878_s3, %s884_s12  ;;  %s832_s29 = scalar_lea.vmem %s877_s2, %s686_s16 }
  0x10   : > { %v254_v1 = vld [vmem:[%s786_s20] sm:$0xff]  ;;  %335 = vmatpush.msra.mxu0 %v270_v0  ;;  %688 = vmatpush.msra.mxu1 %v270_v0  ;;  %v259_v6 = vld [vmem:[%s786_s20 + $0x28] sm:$0xff]  ;;  %v260_v10 = vld [vmem:[%s786_s20 + $0x30] sm:$0xff] }
  0x11   : > { %v258_v2 = vld [vmem:[%s786_s20 + $0x20] sm:$0xff]  ;;  %689 = vmatpush.msra.mxu2 %v270_v0  ;;  %668 = vmatmul.msk.f32.vlgmr.msra.gmra.mxu0 %vm271_vm0, %v254_v1  ;;  %v263_v7 = vld [vmem:[%s786_s20 + $0x48] sm:$0xff]  ;;  %v264_v11 = vld [vmem:[%s786_s20 + $0x50] sm:$0xff] }
  0x12   : > { %v262_v3 = vld [vmem:[%s786_s20 + $0x40] sm:$0xff]  ;;  %672 = vmatmul.msk.f32.vlgmr.msra.gmra.mxu1 %vm271_vm0, %v258_v2  ;;  %690 = vmatpush.msra.mxu3 %v270_v0  ;;  %v267_v8 = vld [vmem:[%s786_s20 + $0x68] sm:$0xff]  ;;  %v268_v12 = vld [vmem:[%s786_s20 + $0x70] sm:$0xff] }
  0x13   : > { %v266_v4 = vld [vmem:[%s786_s20 + $0x60] sm:$0xff]  ;;  %676 = vmatmul.msk.f32.vlgmr.msra.gmra.mxu2 %vm271_vm0, %v262_v3  ;;  %v257_v13 = vld [vmem:[%s786_s20 + $0x18] sm:$0xff] }
  0x14   : > { %680 = vmatmul.msk.f32.vlgmr.msra.gmra.mxu3 %vm271_vm0, %v266_v4  ;;  %v265_v14 = vld [vmem:[%s786_s20 + $0x58] sm:$0xff] }
  0x15   : > { %v261_v15 = vld [vmem:[%s786_s20 + $0x38] sm:$0xff] }
  0x16   : > { %v269_v16 = vld [vmem:[%s786_s20 + $0x78] sm:$0xff] }
  0x19   : > { %669 = vmatmul.msk.f32.gmra.mxu0 %vm271_vm0, %v255_v5 }
  0x1a   : > { %673 = vmatmul.msk.f32.gmra.mxu1 %vm271_vm0, %v259_v6 }
  0x1b   : > { %677 = vmatmul.msk.f32.gmra.mxu2 %vm271_vm0, %v263_v7 }
  0x1c   : > { %681 = vmatmul.msk.f32.gmra.mxu3 %vm271_vm0, %v267_v8 }
  0x21   : > { %670 = vmatmul.msk.f32.gmra.mxu0 %vm271_vm0, %v256_v9 }
  0x22   : > { %674 = vmatmul.msk.f32.gmra.mxu1 %vm271_vm0, %v260_v10 }
  0x23   : > { %678 = vmatmul.msk.f32.gmra.mxu2 %vm271_vm0, %v264_v11 }
  0x24   : > { %682 = vmatmul.msk.f32.gmra.mxu3 %vm271_vm0, %v268_v12 }
  0x29   : > { %671 = vmatmul.msk.f32.gmra.mxu0 %vm271_vm0, %v257_v13 }
  0x2a   : > { %675 = vmatmul.msk.f32.gmra.mxu1 %vm271_vm0, %v261_v15 }
  0x2b   : > { %679 = vmatmul.msk.f32.gmra.mxu2 %vm271_vm0, %v265_v14 }
  0x2c   : > { %683 = vmatmul.msk.f32.gmra.mxu3 %vm271_vm0, %v269_v16 }
  0x8e   : > { %v337_v17 = vpop.f32.mrf.mxu0 }
  0x8f   : > { %v349_v18 = vpop.f32.mrf.mxu1  ;;  %385 = vmin.xlane.f32.xlu0 %v337_v17 }
  0x90   : > { %393 = vmin.xlane.f32.xlu2 %v349_v18  ;;  %v417_v32 = vmin.f32 %v337_v17, %v349_v18 }
  0x96   : > { %v361_v19 = vpop.f32.mrf.mxu2  ;;  %v340_v20 = vpop.f32.mrf.mxu0 }
  0x97   : > { %v352_v21 = vpop.f32.mrf.mxu1  ;;  %v373_v22 = vpop.f32.mrf.mxu3  ;;  %v421_v36 = vmin.f32 %v417_v32, %v361_v19 }
  0x98   : > { %401 = vmin.xlane.f32.xlu2 %v361_v19  ;;  %409 = vmin.xlane.f32.xlu0 %v373_v22  ;;  %v418_v31 = vmin.f32 %v340_v20, %v352_v21 }
  0x99   : > { %v425_v42 = vmin.f32 %v421_v36, %v373_v22 }
  0x9e   : > { %v364_v23 = vpop.f32.mrf.mxu2  ;;  %v343_v24 = vpop.f32.mrf.mxu0 }
  0x9f   : > { %v355_v25 = vpop.f32.mrf.mxu1  ;;  %v376_v26 = vpop.f32.mrf.mxu3  ;;  %389 = vmin.xlane.f32.xlu1 %v343_v24  ;;  %v422_v33 = vmin.f32 %v418_v31, %v364_v23 }
  0xa0   : > { %387 = vmin.xlane.f32.xlu0 %v340_v20  ;;  %395 = vmin.xlane.f32.xlu2 %v352_v21  ;;  %v419_v34 = vmin.f32 %v343_v24, %v355_v25 }
  0xa1   : > { %v426_v39 = vmin.f32 %v422_v33, %v376_v26 }
  0xa3   : > { %v429_v45 = vmin.f32 %v425_v42, %v426_v39 }
  0xa6   : > { %v367_v27 = vpop.f32.mrf.mxu2  ;;  %v346_v28 = vpop.f32.mrf.mxu0 }
  0xa7   : > { %v379_v29 = vpop.f32.mrf.mxu3  ;;  %405 = vmin.xlane.f32.xlu1 %v367_v27  ;;  %v358_v30 = vpop.f32.mrf.mxu1  ;;  %v423_v37 = vmin.f32 %v419_v34, %v367_v27 }
  0xa8   : > { %403 = vmin.xlane.f32.xlu0 %v364_v23  ;;  %v420_v35 = vmin.f32 %v346_v28, %v358_v30 }
  0xa9   : > { %v427_v43 = vmin.f32 %v423_v37, %v379_v29 }
  0xae   : > { %v370_v38 = vpop.f32.mrf.mxu2 }
  0xaf   : > { %v424_v40 = vmin.f32 %v420_v35, %v370_v38  ;;  %407 = vmin.xlane.f32.xlu2 %v370_v38  ;;  %v382_v41 = vpop.f32.mrf.mxu3  ;;  %391 = vmin.xlane.f32.xlu1 %v346_v28 }
  0xb0   : > { %397 = vmin.xlane.f32.xlu0 %v355_v25 }
  0xb1   : > { %v428_v44 = vmin.f32 %v424_v40, %v382_v41 }
  0xb3   : > { %v430_v46 = vmin.f32 %v427_v43, %v428_v44 }
  0xb5   : > { %v431_v47 = vmin.f32 %v429_v45, %v430_v46 }
  0xb7   : > { %v432_v48 = vrot.slane %v431_v47, 4  ;;  %413 = vmin.xlane.f32.xlu2 %v379_v29  ;;  %399 = vmin.xlane.f32.xlu1 %v358_v30 }
  0xb8   : > { %415 = vmin.xlane.f32.xlu0 %v382_v41 }
  0xb9   : > { %v433_v49 = vmin.f32 %v431_v47, %v432_v48 }
  0xbb   : > { %v434_v50 = vrot.slane %v433_v49, 2 }
  0xbd   : > { %v435_v51 = vmin.f32 %v433_v49, %v434_v50 }
  0xbf   : > { %v436_v52 = vrot.slane %v435_v51, 1  ;;  %411 = vmin.xlane.f32.xlu1 %v376_v26 }
  0xc1   : > { %v437_v53 = vmin.f32 %v435_v51, %v436_v52 }
  0xc3   : > { %517 = vst [vmem:[%s253_s26] sm:$0x1] %v437_v53 }
 0x102   : > { %v386_v54 = vpop.xlane.xlu0 %385 }
 0x103   : > { %v394_v55 = vpop.xlane.xlu2 %393  ;;  %443 = vst.msk [vmem:[%s832_s29] sm:$0xff] %vm442_vm1, %v386_v54 }
 0x104   : > { %447 = vst.msk [vmem:[%s832_s29 + $0x20] sm:$0xff] %vm442_vm1, %v394_v55 }
 0x10b   : > { %v402_v56 = vpop.xlane.xlu2 %401  ;;  %v410_v57 = vpop.xlane.xlu0 %409 }
 0x10c   : > { %451 = vst.msk [vmem:[%s832_s29 + $0x40] sm:$0xff] %vm442_vm1, %v402_v56 }
 0x10d   : > { %455 = vst.msk [vmem:[%s832_s29 + $0x60] sm:$0xff] %vm442_vm1, %v410_v57 }
 0x112   : > { %v390_v58 = vpop.xlane.xlu1 %389 }
 0x113   : > { %v388_v59 = vpop.xlane.xlu0 %387  ;;  %445 = vst.msk [vmem:[%s832_s29 + $0x10] sm:$0xff] %vm442_vm1, %v390_v58  ;;  %v396_v60 = vpop.xlane.xlu2 %395 }
 0x114   : > { %444 = vst.msk [vmem:[%s832_s29 + $0x8] sm:$0xff] %vm442_vm1, %v388_v59 }
 0x115   : > { %448 = vst.msk [vmem:[%s832_s29 + $0x28] sm:$0xff] %vm442_vm1, %v396_v60 }
 0x11a   : > { %v406_v61 = vpop.xlane.xlu1 %405 }
 0x11b   : > { %v404_v62 = vpop.xlane.xlu0 %403  ;;  %453 = vst.msk [vmem:[%s832_s29 + $0x50] sm:$0xff] %vm442_vm1, %v406_v61 }
 0x11c   : > { %452 = vst.msk [vmem:[%s832_s29 + $0x48] sm:$0xff] %vm442_vm1, %v404_v62 }
 0x122   : > { %v408_v63 = vpop.xlane.xlu2 %407  ;;  %v392_v0 = vpop.xlane.xlu1 %391 }
 0x123   : > { %454 = vst.msk [vmem:[%s832_s29 + $0x58] sm:$0xff] %vm442_vm1, %v408_v63  ;;  %v398_v1 = vpop.xlane.xlu0 %397 }
 0x124   : > { %446 = vst.msk [vmem:[%s832_s29 + $0x18] sm:$0xff] %vm442_vm1, %v392_v0 }
 0x125   : > { %449 = vst.msk [vmem:[%s832_s29 + $0x30] sm:$0xff] %vm442_vm1, %v398_v1 }
 0x12a   : > { %v414_v2 = vpop.xlane.xlu2 %413  ;;  %v400_v3 = vpop.xlane.xlu1 %399 }
 0x12b   : > { %457 = vst.msk [vmem:[%s832_s29 + $0x70] sm:$0xff] %vm442_vm1, %v414_v2  ;;  %v416_v4 = vpop.xlane.xlu0 %415 }
 0x12c   : > { %450 = vst.msk [vmem:[%s832_s29 + $0x38] sm:$0xff] %vm442_vm1, %v400_v3 }
 0x12d   : > { %458 = vst.msk [vmem:[%s832_s29 + $0x78] sm:$0xff] %vm442_vm1, %v416_v4 }
 0x132   : > { %v412_v5 = vpop.xlane.xlu1 %411 }
 0x133   : > { %456 = vst.msk [vmem:[%s832_s29 + $0x68] sm:$0xff] %vm442_vm1, %v412_v5 }
 0x134 PF: > { %s14_s14 = sadd.s32 1, %s737_s14   ;;  %s879_s12 = smov %s733_s13 }
 0x135   : > { %p11_p5 = scmp.ge.s32.totalorder %s14_s14, 4   ;;  %s880_s13 = smov %s882_s15 }
 0x137   :  { %13 = sbr.rel (!%p11_p5) target bundleno = 2 (0x2), region = 91 }

</bundles_post_ra>
